<compile_context>
chip_gen: v7x
topology: tpu7x:2x2x1
jax: 0.10.0
libtpu: 0.0.40
codegen_flags: <defaults>
</compile_context>

<pallas_src>
import functools

import jax
import jax.numpy as jnp
from jax.experimental import pallas as pl
from jax.experimental.pallas import tpu as pltpu


_LANES = 128
_TILE_BYTES = 4 * 1024 * 1024     # ~4 MiB per input tile (any dtype);
                                  # 2x double-buffered ~8 MiB -> fits every gen.
_SMALL_N = 16384                  # below this, plain-JAX reduce beats the
                                  # fixed pallas_call launch overhead.


# ----------------------- elementwise loss functions (run inside the kernel) --

def _bce_with_logits_elem(x, target):
    # Numerically-stable BCEWithLogits (same formulation PyTorch uses):
    #   max(x, 0) - x * t + log(1 + exp(-|x|))
    # exactly one exp + one log per element (EUP); keep it that way.
    return jnp.maximum(x, 0.0) - x * target + jnp.log(1.0 + jnp.exp(-jnp.abs(x)))


def _mse_elem(x, target):
    d = x - target
    return d * d


def _identity_elem(x, target):
    del target
    return x


# ----------------------- Pallas kernel ---------------------------------------

def _mean_loss_kernel(x_ref, out_ref, *, elem_fn, target, tiles_per_split,
                      n_tiles, partial_rows):
    p = pl.program_id(0)   # "parallel" split of the row range (2-TC shard)
    k = pl.program_id(1)   # "arbitrary" sequential reduction step

    # Output block index is constant along k -> it stays resident in VMEM and
    # doubles as the accumulator (no separate scratch, no final copy).
    @pl.when(k == 0)
    def _():
        out_ref[...] = jnp.zeros_like(out_ref)

    # Stream the native (possibly bf16) dtype from HBM; accumulate in f32.
    # (Per-lane f32 accumulation is fine for discriminator-sized maps; huge
    #  inputs would want per-tile partials for extra precision.)
    x = x_ref[...].astype(jnp.float32)
    vals = elem_fn(x, target)

    if partial_rows == 0:
        # No ragged tile anywhere: every step is a plain unmasked accumulate.
        out_ref[...] += jnp.sum(vals, axis=0, keepdims=True).reshape(1, 1, _LANES)
    else:
        # Only the globally-last tile over-reads past the array edge; gate the
        # mask work onto that single tile so full tiles stay mask-free.
        is_boundary = (p * tiles_per_split + k) == (n_tiles - 1)

        @pl.when(jnp.logical_not(is_boundary))
        def _():
            out_ref[...] += jnp.sum(vals, axis=0,
                                    keepdims=True).reshape(1, 1, _LANES)

        @pl.when(is_boundary)
        def _():
            row = jax.lax.broadcasted_iota(jnp.int32, vals.shape, 0)
            masked = jnp.where(row < partial_rows, vals, 0.0)
            out_ref[...] += jnp.sum(masked, axis=0,
                                    keepdims=True).reshape(1, 1, _LANES)


def _pallas_mean(x, elem_fn, target, *, flops_per_elem, transcendentals_per_elem,
                 tile_bytes=_TILE_BYTES, small_n=_SMALL_N):
    """mean over all elements of elem_fn(x, target), computed with a tiled,
    pipelined Pallas streaming reduction."""
    n_valid = x.size
    x_flat = x.reshape(-1)                       # free (bitcast), no copy

    # Small-input fast path: patch-discriminator-sized outputs are dominated by
    # the pallas_call fixed overhead; XLA's fused reduce is faster.
    if n_valid <= small_n:
        return jnp.mean(elem_fn(x_flat.astype(jnp.float32), float(target)))

    # Pad only to the next multiple of 128 lanes, and only if needed.
    # TODO(synk): a fully zero-copy ragged tail would pass the flat array with
    # memory_space=pl.ANY and DMA the last <128 elements manually; the tiny
    # zero-pad (single XLA pad) is kept for robustness.
    rem = n_valid % _LANES
    pad = (_LANES - rem) % _LANES
    if pad:
        x_flat = jnp.pad(x_flat, (0, pad))
    n_rows = (n_valid + pad) // _LANES
    x2d = x_flat.reshape(n_rows, _LANES)         # lane-dense view

    itemsize = x.dtype.itemsize
    max_blk_rows = max(16, (tile_bytes // (_LANES * itemsize)) // 16 * 16)
    if n_rows <= max_blk_rows:
        blk_rows = n_rows                        # block == full dim (always legal)
        n_tiles = 1
    else:
        blk_rows = max_blk_rows
        n_tiles = pl.cdiv(n_rows, blk_rows)

    # 2-way split of the tile range -> both TensorCores on megacore parts.
    num_splits = 2 if (n_tiles >= 2 and n_tiles % 2 == 0) else 1
    tiles_per_split = n_tiles // num_splits
    partial_rows = n_rows % blk_rows             # valid rows in the ragged last tile

    kernel = functools.partial(
        _mean_loss_kernel, elem_fn=elem_fn, target=float(target),
        tiles_per_split=tiles_per_split, n_tiles=n_tiles,
        partial_rows=partial_rows)

    partials = pl.pallas_call(
        kernel,
        out_shape=jax.ShapeDtypeStruct((num_splits, 1, _LANES), jnp.float32),
        grid=(num_splits, tiles_per_split),
        in_specs=[pl.BlockSpec((blk_rows, _LANES),
                               lambda p, k: (p * tiles_per_split + k, 0))],
        out_specs=pl.BlockSpec((1, 1, _LANES), lambda p, k: (p, 0, 0)),
        compiler_params=pltpu.CompilerParams(
            dimension_semantics=("parallel", "arbitrary"),
            vmem_limit_bytes=32 * 1024 * 1024),
        cost_estimate=pl.CostEstimate(
            flops=flops_per_elem * n_valid,
            transcendentals=transcendentals_per_elem * n_valid,
            bytes_accessed=n_valid * itemsize + num_splits * _LANES * 4),
    )(x2d)

    # Tiny epilogue: cross-lane + cross-core reduce, undo the zero-pad
    # contribution (a constant: elem_fn(0, target) per padded element), mean.
    total = jnp.sum(partials)
    if pad:
        total = total - pad * elem_fn(jnp.float32(0.0), jnp.float32(target))
    return total / n_valid


# ----------------------- GANLoss module port ----------------------------------

class GANLoss:
    """JAX/Pallas port of the PyTorch GANLoss module (forward pass)."""

    def __init__(self, gan_type, real_label_val=1.0, fake_label_val=0.0):
        self.gan_type = gan_type.lower()
        self.real_label_val = real_label_val
        self.fake_label_val = fake_label_val
        if self.gan_type not in ("gan", "ragan", "lsgan", "wgan-gp"):
            raise NotImplementedError(
                "GAN type [{:s}] is not found".format(self.gan_type))

    def get_target_label(self, input, target_is_real):
        if self.gan_type == "wgan-gp":
            return target_is_real
        # The PyTorch module fills a full tensor with a constant; the constant
        # scalar is equivalent and is baked into the kernel at trace time.
        return self.real_label_val if target_is_real else self.fake_label_val

    def __call__(self, input, target_is_real):
        # TODO(synk): pallas_call has no autodiff rule; for GAN training wrap
        # this in jax.custom_vjp whose backward is the trivial per-element
        # derivative / N streaming kernel.
        if self.gan_type == "wgan-gp":
            m = _pallas_mean(input, _identity_elem, 0.0,
                             flops_per_elem=1, transcendentals_per_elem=0)
            return -m if target_is_real else m
        target = self.get_target_label(input, target_is_real)
        if self.gan_type in ("gan", "ragan"):
            return _pallas_mean(input, _bce_with_logits_elem, target,
                                flops_per_elem=6, transcendentals_per_elem=2)
        # lsgan
        return _pallas_mean(input, _mse_elem, target,
                            flops_per_elem=3, transcendentals_per_elem=0)

    # alias to mirror nn.Module.forward
    forward = __call__


# ----------------------- demo / self-check ------------------------------------

if __name__ == "__main__":
    root = jax.random.PRNGKey(0)
    k1, k2, k3 = jax.random.split(root, 3)

    # Tiny patch-discriminator logits -> plain-JAX fast path (semantics only).
    x_tiny = jax.random.normal(k1, (2, 4, 16, 16), dtype=jnp.float32)
    # Medium f32 map, size divisible by 128 -> zero-copy single-tile Pallas path.
    x_f32 = jax.random.normal(k2, (2, 3, 96, 96), dtype=jnp.float32)
    # bf16 map with ragged size -> minimal-pad + epilogue-correction Pallas path.
    x_bf16 = jax.random.normal(k3, (4, 3, 65, 65), dtype=jnp.bfloat16)

    def bce_ref(x, t):
        x = x.astype(jnp.float32)
        return jnp.mean(-(t * jax.nn.log_sigmoid(x)
                          + (1.0 - t) * jax.nn.log_sigmoid(-x)))

    def mse_ref(x, t):
        x = x.astype(jnp.float32)
        return jnp.mean((x - t) ** 2)

    def wgan_ref(x, real):
        m = jnp.mean(x.astype(jnp.float32))
        return -m if real else m

    # ---- full module check over all variants and inputs ----
    cases = [(x_tiny, 1e-5, 1e-6), (x_f32, 1e-5, 1e-6), (x_bf16, 1e-4, 1e-5)]
    for x, rtol, atol in cases:
        for gan_type in ("gan", "ragan", "lsgan", "wgan-gp"):
            loss_mod = GANLoss(gan_type, real_label_val=1.0, fake_label_val=0.0)
            for target_is_real in (True, False):
                loss = jax.block_until_ready(loss_mod(x, target_is_real))
                if gan_type in ("gan", "ragan"):
                    ref = bce_ref(x, 1.0 if target_is_real else 0.0)
                elif gan_type == "lsgan":
                    ref = mse_ref(x, 1.0 if target_is_real else 0.0)
                else:
                    ref = wgan_ref(x, target_is_real)
                assert jnp.allclose(loss, ref, rtol=rtol, atol=atol), (
                    gan_type, target_is_real, tuple(x.shape),
                    float(loss), float(ref))

    # ---- force tiny tiles to exercise multi-tile streaming, the 2-way
    #      (megacore) split, and the boundary-tile mask at small shapes ----
    got = jax.block_until_ready(
        _pallas_mean(x_f32, _bce_with_logits_elem, 1.0,
                     flops_per_elem=6, transcendentals_per_elem=2,
                     tile_bytes=64 * 1024, small_n=0))
    assert jnp.allclose(got, bce_ref(x_f32, 1.0), rtol=1e-5, atol=1e-6), (
        "forced-tile bce", float(got), float(bce_ref(x_f32, 1.0)))

    got = jax.block_until_ready(
        _pallas_mean(x_bf16, _mse_elem, 0.0,
                     flops_per_elem=3, transcendentals_per_elem=0,
                     tile_bytes=64 * 1024, small_n=0))
    assert jnp.allclose(got, mse_ref(x_bf16, 0.0), rtol=1e-4, atol=1e-5), (
        "forced-tile mse", float(got), float(mse_ref(x_bf16, 0.0)))

    print("KERNEL_OK")
</pallas_src>

<mosaic_0001>
module attributes {stable_mosaic.version = 11 : i64} {
  func.func @_mean_loss_kernel(%arg0: i32, %arg1: i32, %arg2: memref<432x128xf32, #tpu.memory_space<vmem>>, %arg3: memref<1x1x128xf32, #tpu.memory_space<vmem>>) attributes {dimension_semantics = [#tpu.dimension_semantics<parallel>, #tpu.dimension_semantics<arbitrary>], iteration_bounds = array<i64: 1, 1>, scalar_prefetch = 0 : i64, scratch_operands = 0 : i64, tpu.core_type = #tpu.core_type<tc>, window_params = [{transform_indices = @transform_0, window_bounds = array<i64: 432, 128>}, {transform_indices = @transform_1, window_bounds = array<i64: 1, 1, 128>}]} {
    %c0_i32 = arith.constant 0 : i32
    %0 = arith.cmpi eq, %arg1, %c0_i32 : i32
    %1 = arith.extui %0 : i1 to i32
    %c0_i32_0 = arith.constant 0 : i32
    %2 = arith.cmpi ne, %1, %c0_i32_0 : i32
    scf.if %2 {
      %cst_12 = arith.constant 0.000000e+00 : f32
      %23 = vector.broadcast %cst_12 : f32 to vector<1x1x128xf32>
      %c0_13 = arith.constant 0 : index
      %c0_14 = arith.constant 0 : index
      %c0_15 = arith.constant 0 : index
      %24 = vector.load %arg3[%c0_13, %c0_14, %c0_15] : memref<1x1x128xf32, #tpu.memory_space<vmem>>, vector<1x1x128xf32>
      tpu.vector_store %arg3[%c0_13, %c0_14, %c0_15], %23 {strides = array<i32>} : memref<1x1x128xf32, #tpu.memory_space<vmem>>, vector<1x1x128xf32>,
    } else {
    }
    %c0 = arith.constant 0 : index
    %c0_1 = arith.constant 0 : index
    %3 = vector.load %arg2[%c0, %c0_1] : memref<432x128xf32, #tpu.memory_space<vmem>>, vector<432x128xf32>
    %cst = arith.constant 0.000000e+00 : f32
    %4 = vector.broadcast %cst : f32 to vector<432x128xf32>
    %5 = arith.maximumf %3, %4 : vector<432x128xf32>
    %cst_2 = arith.constant 1.000000e+00 : f32
    %6 = vector.broadcast %cst_2 : f32 to vector<432x128xf32>
    %7 = arith.mulf %3, %6 : vector<432x128xf32>
    %8 = arith.subf %5, %7 : vector<432x128xf32>
    %9 = math.absf %3 : vector<432x128xf32>
    %cst_3 = arith.constant 0.000000e+00 : f32
    %10 = vector.broadcast %cst_3 : f32 to vector<432x128xf32>
    %11 = arith.subf %10, %9 : vector<432x128xf32>
    %12 = math.exp %11 : vector<432x128xf32>
    %cst_4 = arith.constant 1.000000e+00 : f32
    %13 = vector.broadcast %cst_4 : f32 to vector<432x128xf32>
    %14 = arith.addf %13, %12 : vector<432x128xf32>
    %15 = math.log %14 : vector<432x128xf32>
    %16 = arith.addf %8, %15 : vector<432x128xf32>
    %c0_5 = arith.constant 0 : index
    %c0_6 = arith.constant 0 : index
    %c0_7 = arith.constant 0 : index
    %17 = vector.load %arg3[%c0_5, %c0_6, %c0_7] : memref<1x1x128xf32, #tpu.memory_space<vmem>>, vector<1x1x128xf32>
    %cst_8 = arith.constant dense<0.000000e+00> : vector<128xf32>
    %18 = vector.multi_reduction <add>, %16, %cst_8 [0] : vector<432x128xf32> to vector<128xf32>
    %19 = vector.shape_cast %18 : vector<128xf32> to vector<1x128xf32>
    %20 = vector.shape_cast %19 : vector<1x128xf32> to vector<1x1x128xf32>
    %21 = arith.addf %17, %20 : vector<1x1x128xf32>
    %c0_9 = arith.constant 0 : index
    %c0_10 = arith.constant 0 : index
    %c0_11 = arith.constant 0 : index
    %22 = vector.load %arg3[%c0_9, %c0_10, %c0_11] : memref<1x1x128xf32, #tpu.memory_space<vmem>>, vector<1x1x128xf32>
    tpu.vector_store %arg3[%c0_9, %c0_10, %c0_11], %21 {strides = array<i32>} : memref<1x1x128xf32, #tpu.memory_space<vmem>>, vector<1x1x128xf32>,
    return
  }
  func.func @transform_0(%arg0: i32, %arg1: i32) -> (i32, i32) {
    %c1_i32 = arith.constant 1 : i32
    %0 = arith.muli %arg0, %c1_i32 : i32
    %1 = arith.addi %0, %arg1 : i32
    %c0_i32 = arith.constant 0 : i32
    %c0_i32_0 = arith.constant 0 : i32
    return %1, %c0_i32 : i32, i32
  }
  func.func @transform_1(%arg0: i32, %arg1: i32) -> (i32, i32, i32) {
    %c0_i32 = arith.constant 0 : i32
    %c0_i32_0 = arith.constant 0 : i32
    %c0_i32_1 = arith.constant 0 : i32
    return %arg0, %c0_i32, %c0_i32_0 : i32, i32, i32
  }
}

</mosaic_0001>

<bundles_post_ra>
// kernel: tpu_custom_call.1
= control target key start
LH: loop header
LB: loop body
LE: loop exit
PB: predicated region body
PF: predicated region fallthrough
CT: control target
= control target key end

     0   :  { %6 = vsyncpa [#allocation3], 0  ;;  %s1474_s0 = inlined_call_operand.hbm [shape: f32[432,128], index: 0, kind: input, shape index: {}]   ;;  %s1475_s1 = inlined_call_operand.hbm [shape: f32[1,1,128], index: 1, kind: output, shape index: {}]  }
   0x1   :  { %7 = vsyncpa [#allocation4], 0  ;;  %s978_s6 = smov [#allocation2]   ;;  %s930_s10 = scalar_lea.hbm %s1474_s0, 6912 }
   0x2   :  { %s17_s7 = sshll.u32 %s978_s6, 4  ;;  %p931_p0 = scmp.ne.s32.totalorder %s1474_s0, %s930_s10  ;;  %s18_s7 = int_to_ptr.vmem [resolvable:$true] %s17_s7 }
   0x3   :  { %p934_p1 = scmp.lt.u32.totalorder %s930_s10, %s1474_s0 }
   0x5   :  { %p936_p2 = pnand %p934_p1, %p931_p0 }
   0x7   :  { %939 = shalt.err (!%p936_p2)
}
   0x8   :  { %s940_s15 = scalar_lea.vmem %s18_s7, 6912  ;;  %p945_p4 = scmp.lt.s32.totalorder %s18_s7, %s18_s7 }
   0x9   :  { %p941_p3 = scmp.ne.s32.totalorder %s18_s7, %s940_s15  ;;  %p946_p5 = scmp.lt.s32.totalorder %s940_s15, %s940_s15 }
   0xb   :  { %p947_p6 = por %p946_p5, %p945_p4 }
   0xd   :  { %p948_p7 = pnand %p947_p6, %p941_p3 }
   0xf   :  { %951 = shalt.err (!%p948_p7)
}
  0x10   :  { %s979_s16 = smov 128   ;;  %s980_s17 = smov 8  }
  0x11   :  { %23 = dma.hbm_to_vmem [thread:$0]  %s1474_s0, 6912, %s18_s7, [#allocation3], %s979_s16, %s979_s16, %s980_s17  }
  0x12   :  { %974 = dma.done.wait [#allocation3], 6912  }
  0x13   :  { %975 = vsyncadd [#allocation3], 4294960384  ;;  %v981_v0 = vmov 0.0   ;;  %v1005_v1 = vld [vmem:[#allocation2] sm:$0xff]  ;;  %v1007_v2 = vld [vmem:[#allocation2 + $0x8] sm:$0xff]  ;;  %s982_s0 = smov [#allocation5]  }
  0x14   :  { %33 = vst [vmem:[#allocation5] sm:$0x1] %v981_v0  ;;  %v88_v3 = vmax.f32 %v1005_v1, 0.0  ;;  %v1010_v4 = vld [vmem:[#allocation2 + $0x10] sm:$0xff]  ;;  %v89_v5 = vmax.f32 %v1007_v2, 0.0  ;;  %v1013_v6 = vld [vmem:[#allocation2 + $0x18] sm:$0xff] }
  0x15   :  { %v1015_v7 = vld [vmem:[#allocation2 + $0x20] sm:$0xff]  ;;  %v1017_v8 = vld [vmem:[#allocation2 + $0x28] sm:$0xff]  ;;  %v90_v9 = vmax.f32 %v1010_v4, 0.0  ;;  %v1020_v10 = vld [vmem:[#allocation2 + $0x30] sm:$0xff]  ;;  %v91_v13 = vmax.f32 %v1013_v6, 0.0  ;;  %s696_s20 = sshll.u32 %s982_s0, 4  ;;  %s697_s20 = int_to_ptr.vmem [resolvable:$true] %s696_s20 }
  0x16   :  { %1507 = vst [vmem:[#allocation8_spill] sm:$0xff] %v1020_v10  ;;  %v1022_v11 = vld [vmem:[#allocation2 + $0x38] sm:$0xff]  ;;  %v1024_v12 = vld [vmem:[#allocation2 + $0x40] sm:$0xff]  ;;  %v92_v14 = vmax.f32 %v1015_v7, 0.0  ;;  %v93_v15 = vmax.f32 %v1017_v8, 0.0  ;;  %v1029_v16 = vld [vmem:[#allocation2 + $0x48] sm:$0xff]  ;;  %v1039_v22 = vsub.f32 %v88_v3, %v1005_v1  ;;  %v1051_v29 = vsub.f32 %v89_v5, %v1007_v2  ;;  %p957_p9 = scmp.lt.s32.totalorder %s697_s20, %s697_s20 }
  0x17   :  { %1508 = vst [vmem:[#allocation9_spill] sm:$0xff] %v1022_v11  ;;  %1509 = vst [vmem:[#allocation10_spill] sm:$0xff] %v1024_v12  ;;  %v1031_v17 = vld [vmem:[#allocation2 + $0x50] sm:$0xff]  ;;  %v1033_v18 = vld [vmem:[#allocation2 + $0x58] sm:$0xff]  ;;  %v94_v19 = vmax.f32 %v1020_v10, 0.0  ;;  %v95_v20 = vmax.f32 %v1022_v11, 0.0  ;;  %v1063_v36 = vsub.f32 %v90_v9, %v1010_v4  ;;  %v1075_v43 = vsub.f32 %v91_v13, %v1013_v6 }
  0x18   :  { %v96_v21 = vmax.f32 %v1024_v12, 0.0  ;;  %1510 = vst [vmem:[#allocation11_spill] sm:$0xff] %v1039_v22  ;;  %v1041_v23 = vld [vmem:[#allocation2 + $0x60] sm:$0xff]  ;;  %v1043_v24 = vld [vmem:[#allocation2 + $0x68] sm:$0xff]  ;;  %v1045_v25 = vld [vmem:[#allocation2 + $0x70] sm:$0xff]  ;;  %v97_v26 = vmax.f32 %v1029_v16, 0.0  ;;  %v1087_v50 = vsub.f32 %v92_v14, %v1015_v7  ;;  %v1099_v57 = vsub.f32 %v93_v15, %v1017_v8 }
  0x19   :  { %v98_v27 = vmax.f32 %v1031_v17, 0.0  ;;  %v99_v28 = vmax.f32 %v1033_v18, 0.0  ;;  %1511 = vst [vmem:[#allocation12_spill] sm:$0xff] %v1051_v29  ;;  %v1053_v30 = vld [vmem:[#allocation2 + $0x78] sm:$0xff]  ;;  %v1055_v31 = vld [vmem:[#allocation2 + $0x80] sm:$0xff]  ;;  %v1057_v32 = vld [vmem:[#allocation2 + $0x88] sm:$0xff]  ;;  %v1111_v0 = vsub.f32 %v94_v19, %v1020_v10 }
  0x1a   :  { %v100_v33 = vmax.f32 %v1041_v23, 0.0  ;;  %v101_v34 = vmax.f32 %v1043_v24, 0.0  ;;  %v102_v35 = vmax.f32 %v1045_v25, 0.0  ;;  %1512 = vst [vmem:[#allocation13_spill] sm:$0xff] %v1063_v36  ;;  %v1065_v37 = vld [vmem:[#allocation2 + $0x90] sm:$0xff]  ;;  %v1067_v38 = vld [vmem:[#allocation2 + $0x98] sm:$0xff]  ;;  %v1135_v22 = vsub.f32 %v96_v21, %v1024_v12 }
  0x1b   :  { %v1069_v39 = vld [vmem:[#allocation2 + $0xa0] sm:$0xff]  ;;  %v103_v40 = vmax.f32 %v1053_v30, 0.0  ;;  %v104_v41 = vmax.f32 %v1055_v31, 0.0  ;;  %v105_v42 = vmax.f32 %v1057_v32, 0.0  ;;  %1513 = vst [vmem:[#allocation14_spill] sm:$0xff] %v1075_v43  ;;  %v1077_v44 = vld [vmem:[#allocation2 + $0xa8] sm:$0xff]  ;;  %v1156_v12 = vsub.f32 %v99_v28, %v1033_v18 }
  0x1c   :  { %v1079_v45 = vld [vmem:[#allocation2 + $0xb0] sm:$0xff]  ;;  %v1081_v46 = vld [vmem:[#allocation2 + $0xb8] sm:$0xff]  ;;  %v106_v47 = vmax.f32 %v1065_v37, 0.0  ;;  %v107_v48 = vmax.f32 %v1067_v38, 0.0  ;;  %v108_v49 = vmax.f32 %v1069_v39, 0.0  ;;  %1514 = vst [vmem:[#allocation15_spill] sm:$0xff] %v1087_v50 }
  0x1d   :  { %v1089_v51 = vld [vmem:[#allocation2 + $0xc0] sm:$0xff]  ;;  %v1091_v52 = vld [vmem:[#allocation2 + $0xc8] sm:$0xff]  ;;  %v1093_v53 = vld [vmem:[#allocation2 + $0xd0] sm:$0xff]  ;;  %v109_v54 = vmax.f32 %v1077_v44, 0.0  ;;  %v110_v55 = vmax.f32 %v1079_v45, 0.0  ;;  %v111_v56 = vmax.f32 %v1081_v46, 0.0  ;;  %v1169_v21 = vsub.f32 %v103_v40, %v1053_v30 }
  0x1e   :  { %1515 = vst [vmem:[#allocation16_spill] sm:$0xff] %v1099_v57  ;;  %v1101_v58 = vld [vmem:[#allocation2 + $0xd8] sm:$0xff]  ;;  %v1103_v59 = vld [vmem:[#allocation2 + $0xe0] sm:$0xff]  ;;  %v1105_v60 = vld [vmem:[#allocation2 + $0xe8] sm:$0xff]  ;;  %v112_v61 = vmax.f32 %v1089_v51, 0.0  ;;  %v113_v62 = vmax.f32 %v1091_v52, 0.0  ;;  %v1123_v57 = vsub.f32 %v95_v20, %v1022_v11 }
  0x1f   :  { %1516 = vst [vmem:[#allocation17_spill] sm:$0xff] %v1103_v59  ;;  %1517 = vst [vmem:[#allocation18_spill] sm:$0xff] %v1105_v60  ;;  %v114_v63 = vmax.f32 %v1093_v53, 0.0  ;;  %v1113_v3 = vld [vmem:[#allocation2 + $0xf0] sm:$0xff]  ;;  %v1115_v5 = vld [vmem:[#allocation2 + $0xf8] sm:$0xff]  ;;  %v115_v13 = vmax.f32 %v1101_v58, 0.0  ;;  %v1189_v40 = vsub.f32 %v109_v54, %v1077_v44 }
  0x20   :  { %1518 = vst [vmem:[#allocation19_spill] sm:$0xff] %v1111_v0  ;;  %1519 = vst [vmem:[#allocation20_spill] sm:$0xff] %v1113_v3  ;;  %v1117_v9 = vld [vmem:[#allocation2 + $0x100] sm:$0xff]  ;;  %v116_v14 = vmax.f32 %v1103_v59, 0.0  ;;  %v117_v15 = vmax.f32 %v1105_v60, 0.0  ;;  %v1125_v50 = vld [vmem:[#allocation2 + $0x108] sm:$0xff]  ;;  %v1162_v59 = vsub.f32 %v101_v34, %v1043_v24  ;;  %v1182_v34 = vsub.f32 %v107_v48, %v1067_v38 }
  0x21   :  { %1520 = vst [vmem:[#allocation21_spill] sm:$0xff] %v1115_v5  ;;  %1521 = vst [vmem:[#allocation22_spill] sm:$0xff] %v1117_v9  ;;  %v1127_v43 = vld [vmem:[#allocation2 + $0x110] sm:$0xff]  ;;  %v1129_v19 = vld [vmem:[#allocation2 + $0x118] sm:$0xff]  ;;  %v118_v0 = vmax.f32 %v1113_v3, 0.0  ;;  %v119_v36 = vmax.f32 %v1115_v5, 0.0  ;;  %v1147_v3 = vsub.f32 %v97_v26, %v1029_v16  ;;  %v1153_v5 = vsub.f32 %v98_v27, %v1031_v17 }
  0x22   :  { %1522 = vst [vmem:[#allocation23_spill] sm:$0xff] %v1123_v57  ;;  %1523 = vst [vmem:[#allocation24_spill] sm:$0xff] %v1125_v50  ;;  %v120_v29 = vmax.f32 %v1117_v9, 0.0  ;;  %v1137_v10 = vld [vmem:[#allocation2 + $0x120] sm:$0xff]  ;;  %v1139_v60 = vld [vmem:[#allocation2 + $0x128] sm:$0xff]  ;;  %v121_v57 = vmax.f32 %v1125_v50, 0.0  ;;  %v1159_v50 = vsub.f32 %v100_v33, %v1041_v23  ;;  %v1166_v9 = vsub.f32 %v102_v35, %v1045_v25 }
  0x23   :  { %1524 = vst [vmem:[#allocation25_spill] sm:$0xff] %v1135_v22  ;;  %v1141_v20 = vld [vmem:[#allocation2 + $0x130] sm:$0xff]  ;;  %v196_v26 = vand.u32 2147483647, %v1005_v1  ;;  %v1172_v27 = vsub.f32 %v104_v41, %v1055_v31  ;;  %v197_v28 = vand.u32 2147483647, %v1007_v2  ;;  %v1176_v22 = vsub.f32 %v105_v42, %v1057_v32 }
  0x24   :  { %v1179_v33 = vsub.f32 %v106_v47, %v1065_v37  ;;  %1525 = vst [vmem:[#allocation26_spill] sm:$0xff] %v1182_v34  ;;  %v198_v1 = vand.u32 2147483647, %v1010_v4  ;;  %v1186_v35 = vsub.f32 %v108_v49, %v1069_v39  ;;  %1527 = vst [vmem:[#allocation28_spill] sm:$0xff] %v1189_v40  ;;  %v1192_v41 = vsub.f32 %v110_v55, %v1079_v45  ;;  %v1540_v40 = vld [vmem:[#allocation10_spill] sm:$0xff]  ;;  %s952_s21 = scalar_lea.vmem %s697_s20, 16 }
  0x25   :  { %v199_v2 = vand.u32 2147483647, %v1013_v6  ;;  %v1196_v42 = vsub.f32 %v111_v56, %v1081_v46  ;;  %v1199_v47 = vsub.f32 %v112_v61, %v1089_v51  ;;  %v200_v48 = vand.u32 2147483647, %v1015_v7  ;;  %v1536_v61 = vld [vmem:[#allocation8_spill] sm:$0xff]  ;;  %p953_p8 = scmp.ne.s32.totalorder %s697_s20, %s952_s21  ;;  %s956_s22 = scalar_lea.vmem %s697_s20, 32 }
  0x26   :  { %1526 = vst [vmem:[#allocation27_spill] sm:$0xff] %v1186_v35  ;;  %1528 = vst [vmem:[#allocation29_spill] sm:$0xff] %v1192_v41  ;;  %v250_v4 = vsub.f32 0.0, %v196_v26  ;;  %v1203_v49 = vsub.f32 %v113_v62, %v1091_v52  ;;  %v1206_v54 = vsub.f32 %v114_v63, %v1093_v53  ;;  %v201_v55 = vand.u32 2147483647, %v1017_v8  ;;  %v1534_v56 = vld [vmem:[#allocation17_spill] sm:$0xff]  ;;  %p958_p10 = scmp.lt.s32.totalorder %s956_s22, %s952_s21 }
  0x27   :  { %1529 = vst [vmem:[#allocation30_spill] sm:$0xff] %v1196_v42  ;;  %1530 = vst [vmem:[#allocation31_spill] sm:$0xff] %v1199_v47  ;;  %v251_v11 = vsub.f32 0.0, %v197_v28  ;;  %v1210_v6 = vsub.f32 %v115_v13, %v1101_v58  ;;  %v1213_v42 = vsub.f32 %v116_v14, %v1534_v56  ;;  %v202_v47 = vand.u32 2147483647, %v1536_v61  ;;  %v1537_v7 = vld [vmem:[#allocation18_spill] sm:$0xff] }
  0x28   :  { %1531 = vst [vmem:[#allocation32_spill] sm:$0xff] %v1203_v49  ;;  %1532 = vst [vmem:[#allocation33_spill] sm:$0xff] %v1206_v54  ;;  %v252_v41 = vsub.f32 0.0, %v198_v1  ;;  %v1217_v26 = vsub.f32 %v117_v15, %v1537_v7  ;;  %v1539_v62 = vld [vmem:[#allocation9_spill] sm:$0xff]  ;;  %v204_v63 = vand.u32 2147483647, %v1540_v40  ;;  %p959_p11 = por %p958_p10, %p957_p9 }
  0x29   :  { %1533 = vst [vmem:[#allocation34_spill] sm:$0xff] %v1210_v6  ;;  %1535 = vst [vmem:[#allocation17_spill] sm:$0xff] %v1213_v42  ;;  %v203_v49 = vand.u32 2147483647, %v1539_v62  ;;  %v253_v54 = vsub.f32 0.0, %v199_v2  ;;  %v1541_v35 = vld [vmem:[#allocation20_spill] sm:$0xff] }
  0x2a   :  { %1538 = vst [vmem:[#allocation8_spill] sm:$0xff] %v1217_v26  ;;  %v1222_v8 = vsub.f32 %v118_v0, %v1541_v35  ;;  %v205_v13 = vand.u32 2147483647, %v1029_v16  ;;  %v254_v28 = vsub.f32 0.0, %v200_v48  ;;  %v304_v6 = vmul.f32 1.442695, %v250_v4  ;;  %p960_p12 = pnand %p959_p11, %p953_p8 }
  0x2b   :  { %v1543_v14 = vld [vmem:[#allocation21_spill] sm:$0xff]  ;;  %v206_v1 = vand.u32 2147483647, %v1031_v17  ;;  %v255_v61 = vsub.f32 0.0, %v201_v55  ;;  %v306_v15 = vmul.f32 1.442695, %v251_v11 }
  0x2c   :  { %1542 = vst [vmem:[#allocation18_spill] sm:$0xff] %v1222_v8  ;;  %v1226_v42 = vsub.f32 %v119_v36, %v1543_v14  ;;  %v1545_v26 = vld [vmem:[#allocation22_spill] sm:$0xff]  ;;  %v207_v40 = vand.u32 2147483647, %v1033_v18  ;;  %v256_v2 = vsub.f32 0.0, %v202_v47  ;;  %v1547_v0 = vld [vmem:[#allocation24_spill] sm:$0xff]  ;;  %710 = vpow2.f32 %v304_v6 }
  0x2d   :  { %v1230_v34 = vsub.f32 %v120_v29, %v1545_v26  ;;  %v308_v62 = vmul.f32 1.442695, %v252_v41  ;;  %v1234_v8 = vsub.f32 %v121_v57, %v1547_v0  ;;  %v208_v16 = vand.u32 2147483647, %v1041_v23  ;;  %v1294_v23 = vld [vmem:[#allocation2 + $0x188] sm:$0xff] }
  0x2e   :  { %1544 = vst [vmem:[#allocation9_spill] sm:$0xff] %v1226_v42  ;;  %v257_v48 = vsub.f32 0.0, %v203_v49  ;;  %v310_v4 = vmul.f32 1.442695, %v253_v54  ;;  %v209_v36 = vand.u32 2147483647, %v1043_v24  ;;  %712 = vpow2.f32 %v306_v15 }
  0x2f   :  { %1546 = vst [vmem:[#allocation10_spill] sm:$0xff] %v1230_v34  ;;  %1548 = vst [vmem:[#allocation20_spill] sm:$0xff] %v1234_v8  ;;  %v210_v17 = vand.u32 2147483647, %v1045_v25  ;;  %v312_v11 = vmul.f32 1.442695, %v254_v28  ;;  %714 = vpow2.f32 %v308_v62 }
  0x30   :  { %v211_v29 = vand.u32 2147483647, %v1053_v30  ;;  %v258_v55 = vsub.f32 0.0, %v204_v63  ;;  %v314_v18 = vmul.f32 1.442695, %v255_v61  ;;  %v259_v47 = vsub.f32 0.0, %v205_v13 }
  0x31   :  { %v212_v41 = vand.u32 2147483647, %v1055_v31  ;;  %v316_v57 = vmul.f32 1.442695, %v256_v2  ;;  %v260_v49 = vsub.f32 0.0, %v206_v1  ;;  %716 = vpow2.f32 %v310_v4  ;;  %v1283_v25 = vld [vmem:[#allocation2 + $0x170] sm:$0xff] }
  0x32   :  { %v318_v54 = vmul.f32 1.442695, %v257_v48  ;;  %v261_v6 = vsub.f32 0.0, %v207_v40  ;;  %718 = vpow2.f32 %v312_v11  ;;  %v262_v63 = vsub.f32 0.0, %v208_v16  ;;  %1552 = vst [vmem:[#allocation24_spill] sm:$0xff] %v1283_v25  ;;  %v1292_v24 = vld [vmem:[#allocation2 + $0x180] sm:$0xff] }
  0x33   :  { %720 = vpow2.f32 %v314_v18  ;;  %v320_v28 = vmul.f32 1.442695, %v258_v55  ;;  %v263_v61 = vsub.f32 0.0, %v209_v36  ;;  %v322_v15 = vmul.f32 1.442695, %v259_v47  ;;  %v1261_v36 = vld [vmem:[#allocation2 + $0x140] sm:$0xff] }
  0x34   :  { %722 = vpow2.f32 %v316_v57  ;;  %v264_v2 = vsub.f32 0.0, %v210_v17  ;;  %v324_v62 = vmul.f32 1.442695, %v260_v49  ;;  %v1549_v48 = vmax.f32 %v1127_v43, 0.0  ;;  %v1288_v17 = vld [vmem:[#allocation2 + $0x178] sm:$0xff]  ;;  %1554 = vst [vmem:[#allocation36_spill] sm:$0xff] %v1292_v24 }
  0x35   :  { %724 = vpow2.f32 %v318_v54  ;;  %v265_v16 = vsub.f32 0.0, %v211_v29  ;;  %v326_v11 = vmul.f32 1.442695, %v261_v6  ;;  %v328_v18 = vmul.f32 1.442695, %v262_v63  ;;  %1553 = vst [vmem:[#allocation35_spill] sm:$0xff] %v1288_v17 }
  0x36   :  { %v1250_v40 = vsub.f32 %v1549_v48, %v1127_v43  ;;  %726 = vpow2.f32 %v320_v28  ;;  %v711_v47 = vpop.eup %710  ;;  %v330_v49 = vmul.f32 1.442695, %v263_v61  ;;  %v1257_v48 = vld [vmem:[#allocation2 + $0x138] sm:$0xff]  ;;  %v332_v6 = vmul.f32 1.442695, %v264_v2  ;;  %v1265_v61 = vld [vmem:[#allocation2 + $0x148] sm:$0xff] }
  0x37   :  { %728 = vpow2.f32 %v322_v15  ;;  %v334_v57 = vmul.f32 1.442695, %v265_v16  ;;  %v412_v29 = vadd.f32 1.0, %v711_v47  ;;  %v1269_v2 = vld [vmem:[#allocation2 + $0x150] sm:$0xff]  ;;  %v1273_v16 = vld [vmem:[#allocation2 + $0x158] sm:$0xff]  ;;  %v1277_v47 = vld [vmem:[#allocation2 + $0x160] sm:$0xff] }
  0x38   :  { %1550 = vst [vmem:[#allocation21_spill] sm:$0xff] %v1250_v40  ;;  %v713_v54 = vpop.eup %712  ;;  %730 = vpow2.f32 %v324_v62  ;;  %v1555_v31 = vand.u32 2147483647, %v1057_v32  ;;  %v1299_v40 = vld [vmem:[#allocation2 + $0x190] sm:$0xff]  ;;  %v1303_v8 = vld [vmem:[#allocation2 + $0x198] sm:$0xff] }
  0x39   :  { %v715_v55 = vpop.eup %714  ;;  %732 = vpow2.f32 %v326_v11  ;;  %v413_v28 = vadd.f32 1.0, %v713_v54  ;;  %v1281_v54 = vld [vmem:[#allocation2 + $0x168] sm:$0xff]  ;;  %1556 = vst [vmem:[#allocation37_spill] sm:$0xff] %v1299_v40  ;;  %1557 = vst [vmem:[#allocation38_spill] sm:$0xff] %v1303_v8  ;;  %v1558_v13 = vand.u32 2147483647, %v1065_v37 }
  0x3a   :  { %734 = vpow2.f32 %v328_v18  ;;  %v414_v4 = vadd.f32 1.0, %v715_v55  ;;  %1551 = vst [vmem:[#allocation22_spill] sm:$0xff] %v1281_v54  ;;  %v1561_v34 = vand.u32 2147483647, %v1067_v38  ;;  %v1563_v24 = vand.u32 2147483647, %v1077_v44 }
  0x3b   :  { %v717_v15 = vpop.eup %716  ;;  %736 = vpow2.f32 %v330_v49  ;;  %v268_v32 = vsub.f32 0.0, %v1558_v13  ;;  %v1565_v25 = vand.u32 2147483647, %v1081_v46  ;;  %v1567_v46 = vld [vmem:[#allocation11_spill] sm:$0xff] }
  0x3c   :  { %v719_v62 = vpop.eup %718  ;;  %738 = vpow2.f32 %v332_v6  ;;  %v415_v63 = vadd.f32 1.0, %v717_v15  ;;  %v266_v6 = vsub.f32 0.0, %v212_v41  ;;  %v267_v41 = vsub.f32 0.0, %v1555_v31 }
  0x3d   :  { %v721_v11 = vpop.eup %720  ;;  %740 = vpow2.f32 %v334_v57  ;;  %v416_v55 = vadd.f32 1.0, %v719_v62  ;;  %v269_v37 = vsub.f32 0.0, %v1561_v34  ;;  %v271_v17 = vsub.f32 0.0, %v1563_v24 }
  0x3e   :  { %v723_v18 = vpop.eup %722  ;;  %742 = vlog2.f32 %v412_v29  ;;  %v417_v57 = vadd.f32 1.0, %v721_v11  ;;  %v336_v31 = vmul.f32 1.442695, %v266_v6  ;;  %v338_v13 = vmul.f32 1.442695, %v267_v41 }
  0x3f   :  { %v725_v49 = vpop.eup %724  ;;  %744 = vlog2.f32 %v413_v28  ;;  %v418_v62 = vadd.f32 1.0, %v723_v18  ;;  %v1308_v18 = vld [vmem:[#allocation2 + $0x1a0] sm:$0xff]  ;;  %v340_v54 = vmul.f32 1.442695, %v268_v32  ;;  %v1566_v24 = vand.u32 2147483647, %v1089_v51 }
  0x40   :  { %v727_v15 = vpop.eup %726  ;;  %746 = vlog2.f32 %v414_v4  ;;  %v419_v28 = vadd.f32 1.0, %v725_v49  ;;  %1559 = vst [vmem:[#allocation39_spill] sm:$0xff] %v1308_v18  ;;  %v1312_v49 = vld [vmem:[#allocation2 + $0x1a8] sm:$0xff]  ;;  %v1568_v51 = vld [vmem:[#allocation12_spill] sm:$0xff] }
  0x41   :  { %v729_v29 = vpop.eup %728  ;;  %748 = vlog2.f32 %v415_v63  ;;  %v420_v11 = vadd.f32 1.0, %v727_v15  ;;  %1560 = vst [vmem:[#allocation40_spill] sm:$0xff] %v1312_v49  ;;  %v274_v32 = vsub.f32 0.0, %v1566_v24 }
  0x42   :  { %v731_v1 = vpop.eup %730  ;;  %750 = vlog2.f32 %v416_v55  ;;  %v421_v42 = vadd.f32 1.0, %v729_v29  ;;  %v1564_v29 = vand.u32 2147483647, %v1079_v45 }
  0x43   :  { %v733_v4 = vpop.eup %732  ;;  %752 = vlog2.f32 %v417_v57  ;;  %v1562_v57 = vand.u32 2147483647, %v1069_v39  ;;  %v273_v39 = vsub.f32 0.0, %v1565_v25 }
  0x44   :  { %v735_v63 = vpop.eup %734  ;;  %754 = vlog2.f32 %v418_v62  ;;  %v422_v62 = vadd.f32 1.0, %v731_v1 }
  0x45   :  { %v737_v6 = vpop.eup %736  ;;  %756 = vlog2.f32 %v419_v28  ;;  %v270_v15 = vsub.f32 0.0, %v1562_v57  ;;  %v272_v28 = vsub.f32 0.0, %v1564_v29  ;;  %v342_v57 = vmul.f32 1.442695, %v269_v37 }
  0x46   :  { %v739_v30 = vpop.eup %738  ;;  %758 = vpow2.f32 %v336_v31  ;;  %v423_v31 = vadd.f32 1.0, %v733_v4  ;;  %v424_v45 = vadd.f32 1.0, %v735_v63  ;;  %v1570_v63 = vld [vmem:[#allocation14_spill] sm:$0xff] }
  0x47   :  { %v741_v38 = vpop.eup %740  ;;  %760 = vlog2.f32 %v420_v11  ;;  %v344_v1 = vmul.f32 1.442695, %v270_v15  ;;  %v346_v11 = vmul.f32 1.442695, %v271_v17  ;;  %v348_v37 = vmul.f32 1.442695, %v272_v28 }
  0x48   :  { %v743_v55 = vpop.eup %742  ;;  %762 = vpow2.f32 %v338_v13  ;;  %v350_v28 = vmul.f32 1.442695, %v273_v39 }
  0x49   :  { %v745_v44 = vpop.eup %744  ;;  %v467_v8 = vmul.f32 0.6931472, %v743_v55  ;;  %764 = vlog2.f32 %v421_v42  ;;  %v425_v55 = vadd.f32 1.0, %v737_v6 }
  0x4a   :  { %v747_v34 = vpop.eup %746  ;;  %766 = vpow2.f32 %v340_v54  ;;  %v469_v41 = vmul.f32 0.6931472, %v745_v44  ;;  %v1569_v54 = vld [vmem:[#allocation13_spill] sm:$0xff] }
  0x4b   :  { %v749_v49 = vpop.eup %748  ;;  %v471_v29 = vmul.f32 0.6931472, %v747_v34  ;;  %768 = vlog2.f32 %v422_v62  ;;  %v574_v25 = vadd.f32 %v467_v8, %v1567_v46  ;;  %v1571_v8 = vand.u32 2147483647, %v1091_v52  ;;  %v1572_v46 = vld [vmem:[#allocation15_spill] sm:$0xff] }
  0x4c   :  { %v751_v13 = vpop.eup %750  ;;  %770 = vpow2.f32 %v342_v57  ;;  %v473_v18 = vmul.f32 0.6931472, %v749_v49  ;;  %v575_v24 = vadd.f32 %v469_v41, %v1568_v51  ;;  %v426_v49 = vadd.f32 1.0, %v739_v30 }
  0x4d   :  { %v753_v4 = vpop.eup %752  ;;  %v475_v42 = vmul.f32 0.6931472, %v751_v13  ;;  %772 = vlog2.f32 %v423_v31  ;;  %v576_v15 = vadd.f32 %v471_v29, %v1569_v54  ;;  %v275_v57 = vsub.f32 0.0, %v1571_v8  ;;  %v1578_v8 = vld [vmem:[#allocation23_spill] sm:$0xff] }
  0x4e   :  { %v755_v17 = vpop.eup %754  ;;  %774 = vpow2.f32 %v344_v1  ;;  %v477_v44 = vmul.f32 0.6931472, %v753_v4  ;;  %v577_v34 = vadd.f32 %v473_v18, %v1570_v63  ;;  %v629_v62 = vadd.f32 %v575_v24, %v574_v25  ;;  %v1574_v24 = vld [vmem:[#allocation16_spill] sm:$0xff]  ;;  %v1576_v63 = vld [vmem:[#allocation19_spill] sm:$0xff] }
  0x4f   :  { %v757_v40 = vpop.eup %756  ;;  %776 = vlog2.f32 %v424_v45  ;;  %v479_v6 = vmul.f32 0.6931472, %v755_v17  ;;  %v578_v31 = vadd.f32 %v475_v42, %v1572_v46  ;;  %v1573_v1 = vand.u32 2147483647, %v1093_v53 }
  0x50   :  { %v759_v41 = vpop.eup %758  ;;  %778 = vpow2.f32 %v346_v11  ;;  %v630_v13 = vadd.f32 %v629_v62, %v576_v15  ;;  %v352_v4 = vmul.f32 1.442695, %v274_v32  ;;  %v427_v18 = vadd.f32 1.0, %v741_v38 }
  0x51   :  { %v761_v29 = vpop.eup %760  ;;  %v276_v51 = vsub.f32 0.0, %v1573_v1  ;;  %780 = vlog2.f32 %v425_v55  ;;  %v481_v52 = vmul.f32 0.6931472, %v757_v40  ;;  %v579_v39 = vadd.f32 %v477_v44, %v1574_v24 }
  0x52   :  { %v763_v25 = vpop.eup %762  ;;  %782 = vpow2.f32 %v348_v37  ;;  %v631_v30 = vadd.f32 %v630_v13, %v577_v34  ;;  %v1575_v11 = vand.u32 2147483647, %v1101_v58  ;;  %v354_v17 = vmul.f32 1.442695, %v275_v57 }
  0x53   :  { %v765_v45 = vpop.eup %764  ;;  %v428_v42 = vadd.f32 1.0, %v759_v41  ;;  %784 = vlog2.f32 %v426_v49  ;;  %v483_v53 = vmul.f32 0.6931472, %v761_v29  ;;  %v580_v32 = vadd.f32 %v479_v6, %v1576_v63  ;;  %v1580_v29 = vld [vmem:[#allocation25_spill] sm:$0xff] }
  0x54   :  { %v277_v54 = vsub.f32 0.0, %v1575_v11  ;;  %v767_v15 = vpop.eup %766  ;;  %786 = vpow2.f32 %v350_v28  ;;  %v632_v38 = vadd.f32 %v631_v30, %v578_v31  ;;  %v1577_v37 = vand.u32 2147483647, %v1534_v56 }
  0x55   :  { %v769_v55 = vpop.eup %768  ;;  %v356_v62 = vmul.f32 1.442695, %v276_v51  ;;  %v429_v44 = vadd.f32 1.0, %v763_v25  ;;  %788 = vlog2.f32 %v427_v18  ;;  %v485_v58 = vmul.f32 0.6931472, %v765_v45 }
  0x56   :  { %v278_v40 = vsub.f32 0.0, %v1577_v37  ;;  %v771_v34 = vpop.eup %770  ;;  %790 = vpow2.f32 %v352_v4  ;;  %v581_v57 = vadd.f32 %v481_v52, %v1578_v8  ;;  %v633_v41 = vadd.f32 %v632_v38, %v579_v39 }
  0x57   :  { %v773_v49 = vpop.eup %772  ;;  %v1579_v28 = vand.u32 2147483647, %v1537_v7  ;;  %v358_v13 = vmul.f32 1.442695, %v277_v54  ;;  %v430_v6 = vadd.f32 1.0, %v767_v15  ;;  %792 = vlog2.f32 %v428_v42 }
  0x58   :  { %v775_v31 = vpop.eup %774  ;;  %794 = vpow2.f32 %v354_v17  ;;  %v487_v56 = vmul.f32 0.6931472, %v769_v55  ;;  %v582_v1 = vadd.f32 %v483_v53, %v1580_v29  ;;  %v634_v51 = vadd.f32 %v633_v41, %v580_v32 }
  0x59   :  { %v279_v46 = vsub.f32 0.0, %v1579_v28  ;;  %v777_v18 = vpop.eup %776  ;;  %v1581_v4 = vand.u32 2147483647, %v1541_v35  ;;  %v360_v24 = vmul.f32 1.442695, %v278_v40  ;;  %v431_v52 = vadd.f32 1.0, %v771_v34 }
  0x5a   :  { %796 = vlog2.f32 %v429_v44  ;;  %v779_v39 = vpop.eup %778  ;;  %v489_v7 = vmul.f32 0.6931472, %v773_v49  ;;  %v583_v30 = vadd.f32 %v485_v58, %v1147_v3  ;;  %v635_v45 = vadd.f32 %v634_v51, %v581_v57 }
  0x5b   :  { %v280_v25 = vsub.f32 0.0, %v1581_v4  ;;  %798 = vpow2.f32 %v356_v62  ;;  %v781_v11 = vpop.eup %780  ;;  %v1582_v54 = vand.u32 2147483647, %v1543_v14  ;;  %v362_v42 = vmul.f32 1.442695, %v279_v46 }
  0x5c   :  { %v432_v15 = vadd.f32 1.0, %v775_v31  ;;  %800 = vlog2.f32 %v430_v6  ;;  %v783_v53 = vpop.eup %782  ;;  %v491_v35 = vmul.f32 0.6931472, %v777_v18  ;;  %v584_v63 = vadd.f32 %v487_v56, %v1153_v5 }
  0x5d   :  { %v281_v17 = vsub.f32 0.0, %v1582_v54  ;;  %802 = vpow2.f32 %v358_v13  ;;  %v636_v32 = vadd.f32 %v635_v45, %v582_v1  ;;  %v785_v38 = vpop.eup %784  ;;  %v1583_v55 = vand.u32 2147483647, %v1545_v26 }
  0x5e   :  { %v364_v40 = vmul.f32 1.442695, %v280_v25  ;;  %v433_v3 = vadd.f32 1.0, %v779_v39  ;;  %804 = vlog2.f32 %v431_v52  ;;  %v787_v62 = vpop.eup %786  ;;  %v493_v14 = vmul.f32 0.6931472, %v781_v11 }
  0x5f   :  { %v282_v37 = vsub.f32 0.0, %v1583_v55  ;;  %806 = vpow2.f32 %v360_v24  ;;  %v585_v44 = vadd.f32 %v489_v7, %v1156_v12  ;;  %v637_v34 = vadd.f32 %v636_v32, %v583_v30  ;;  %v789_v58 = vpop.eup %788 }
  0x60   :  { %v1584_v8 = vand.u32 2147483647, %v1547_v0  ;;  %v366_v41 = vmul.f32 1.442695, %v281_v17  ;;  %v434_v5 = vadd.f32 1.0, %v783_v53  ;;  %808 = vlog2.f32 %v432_v15  ;;  %v791_v49 = vpop.eup %790 }
  0x61   :  { %810 = vpow2.f32 %v362_v42  ;;  %v495_v26 = vmul.f32 0.6931472, %v785_v38  ;;  %v586_v28 = vadd.f32 %v491_v35, %v1159_v50  ;;  %v638_v46 = vadd.f32 %v637_v34, %v584_v63  ;;  %v793_v13 = vpop.eup %792 }
  0x62   :  { %v283_v57 = vsub.f32 0.0, %v1584_v8  ;;  %v1585_v6 = vand.u32 2147483647, %v1127_v43  ;;  %v368_v56 = vmul.f32 1.442695, %v282_v37  ;;  %v435_v12 = vadd.f32 1.0, %v787_v62  ;;  %v795_v29 = vpop.eup %794 }
  0x63   :  { %812 = vlog2.f32 %v433_v3  ;;  %v497_v0 = vmul.f32 0.6931472, %v789_v58  ;;  %v587_v1 = vadd.f32 %v493_v14, %v1162_v59  ;;  %v639_v51 = vadd.f32 %v638_v46, %v585_v44 }
  0x64   :  { %v284_v31 = vsub.f32 0.0, %v1585_v6  ;;  %814 = vpow2.f32 %v364_v40  ;;  %v797_v18 = vpop.eup %796  ;;  %v1586_v4 = vand.u32 2147483647, %v1129_v19  ;;  %v370_v24 = vmul.f32 1.442695, %v283_v57 }
  0x65   :  { %v436_v50 = vadd.f32 1.0, %v791_v49  ;;  %816 = vlog2.f32 %v434_v5  ;;  %v799_v52 = vpop.eup %798  ;;  %v499_v43 = vmul.f32 0.6931472, %v793_v13  ;;  %v588_v39 = vadd.f32 %v495_v26, %v1166_v9 }
  0x66   :  { %v285_v25 = vsub.f32 0.0, %v1586_v4  ;;  %818 = vpow2.f32 %v366_v41  ;;  %v640_v7 = vadd.f32 %v639_v51, %v586_v28  ;;  %v801_v30 = vpop.eup %800  ;;  %v1587_v45 = vand.u32 2147483647, %v1137_v10 }
  0x67   :  { %v372_v54 = vmul.f32 1.442695, %v284_v31  ;;  %v437_v59 = vadd.f32 1.0, %v795_v29  ;;  %820 = vlog2.f32 %v435_v12  ;;  %v803_v17 = vpop.eup %802  ;;  %v501_v42 = vmul.f32 0.6931472, %v797_v18  ;;  %v1592_v18 = vld [vmem:[#allocation26_spill] sm:$0xff] }
  0x68   :  { %v286_v11 = vsub.f32 0.0, %v1587_v45  ;;  %822 = vpow2.f32 %v368_v56  ;;  %v589_v15 = vadd.f32 %v497_v0, %v1169_v21  ;;  %v641_v53 = vadd.f32 %v640_v7, %v587_v1  ;;  %v805_v35 = vpop.eup %804 }
  0x69   :  { %v1588_v63 = vand.u32 2147483647, %v1139_v60  ;;  %v374_v38 = vmul.f32 1.442695, %v285_v25  ;;  %v438_v9 = vadd.f32 1.0, %v799_v52  ;;  %824 = vlog2.f32 %v436_v50  ;;  %v807_v55 = vpop.eup %806 }
  0x6a   :  { %826 = vpow2.f32 %v370_v24  ;;  %v503_v37 = vmul.f32 0.6931472, %v801_v30  ;;  %v590_v40 = vadd.f32 %v499_v43, %v1172_v27  ;;  %v642_v3 = vadd.f32 %v641_v53, %v588_v39  ;;  %v809_v62 = vpop.eup %808  ;;  %v1594_v30 = vld [vmem:[#allocation27_spill] sm:$0xff] }
  0x6b   :  { %v287_v32 = vsub.f32 0.0, %v1588_v63  ;;  %v1589_v14 = vand.u32 2147483647, %v1141_v20  ;;  %v376_v34 = vmul.f32 1.442695, %v286_v11  ;;  %v439_v21 = vadd.f32 1.0, %v803_v17  ;;  %v811_v58 = vpop.eup %810 }
  0x6c   :  { %828 = vlog2.f32 %v437_v59  ;;  %v505_v8 = vmul.f32 0.6931472, %v805_v35  ;;  %v591_v57 = vadd.f32 %v501_v42, %v1176_v22  ;;  %v643_v41 = vadd.f32 %v642_v3, %v589_v15  ;;  %v1596_v63 = vld [vmem:[#allocation28_spill] sm:$0xff] }
  0x6d   :  { %v288_v44 = vsub.f32 0.0, %v1589_v14  ;;  %830 = vpow2.f32 %v372_v54  ;;  %v813_v5 = vpop.eup %812  ;;  %v1590_v49 = vand.u32 2147483647, %v1257_v48  ;;  %v378_v28 = vmul.f32 1.442695, %v287_v32 }
  0x6e   :  { %v440_v27 = vadd.f32 1.0, %v807_v55  ;;  %832 = vlog2.f32 %v438_v9  ;;  %v815_v46 = vpop.eup %814  ;;  %v507_v13 = vmul.f32 0.6931472, %v809_v62  ;;  %v592_v6 = vadd.f32 %v503_v37, %v1179_v33 }
  0x6f   :  { %v289_v26 = vsub.f32 0.0, %v1590_v49  ;;  %834 = vpow2.f32 %v374_v38  ;;  %v644_v31 = vadd.f32 %v643_v41, %v590_v40  ;;  %v817_v56 = vpop.eup %816  ;;  %v1591_v12 = vand.u32 2147483647, %v1261_v36 }
  0x70   :  { %v380_v0 = vmul.f32 1.442695, %v288_v44  ;;  %v441_v22 = vadd.f32 1.0, %v811_v58  ;;  %836 = vlog2.f32 %v439_v21  ;;  %v819_v1 = vpop.eup %818  ;;  %v509_v51 = vmul.f32 0.6931472, %v813_v5  ;;  %v1598_v44 = vld [vmem:[#allocation29_spill] sm:$0xff] }
  0x71   :  { %v290_v29 = vsub.f32 0.0, %v1591_v12  ;;  %838 = vpow2.f32 %v376_v34  ;;  %v593_v4 = vadd.f32 %v505_v8, %v1592_v18  ;;  %v645_v25 = vadd.f32 %v644_v31, %v591_v57  ;;  %v821_v24 = vpop.eup %820 }
  0x72   :  { %v1593_v50 = vand.u32 2147483647, %v1265_v61  ;;  %v382_v43 = vmul.f32 1.442695, %v289_v26  ;;  %v442_v33 = vadd.f32 1.0, %v815_v46  ;;  %840 = vlog2.f32 %v440_v27  ;;  %v823_v39 = vpop.eup %822 }
  0x73   :  { %842 = vpow2.f32 %v378_v28  ;;  %v511_v7 = vmul.f32 0.6931472, %v817_v56  ;;  %v594_v45 = vadd.f32 %v507_v13, %v1594_v30  ;;  %v646_v11 = vadd.f32 %v645_v25, %v592_v6  ;;  %v825_v54 = vpop.eup %824  ;;  %v1600_v28 = vld [vmem:[#allocation30_spill] sm:$0xff]  ;;  %v1604_v25 = vld [vmem:[#allocation24_spill] sm:$0xff] }
  0x74   :  { %v291_v52 = vsub.f32 0.0, %v1593_v50  ;;  %v1595_v59 = vand.u32 2147483647, %v1269_v2  ;;  %v384_v42 = vmul.f32 1.442695, %v290_v29  ;;  %v443_v15 = vadd.f32 1.0, %v819_v1  ;;  %v827_v53 = vpop.eup %826 }
  0x75   :  { %844 = vlog2.f32 %v441_v22  ;;  %v513_v35 = vmul.f32 0.6931472, %v821_v24  ;;  %v595_v32 = vadd.f32 %v509_v51, %v1596_v63  ;;  %v647_v38 = vadd.f32 %v646_v11, %v593_v4  ;;  %v1601_v6 = vld [vmem:[#allocation22_spill] sm:$0xff]  ;;  %v1603_v1 = vld [vmem:[#allocation31_spill] sm:$0xff]  ;;  %v1609_v63 = vld [vmem:[#allocation33_spill] sm:$0xff] }
  0x76   :  { %v292_v17 = vsub.f32 0.0, %v1595_v59  ;;  %846 = vpow2.f32 %v380_v0  ;;  %v829_v9 = vpop.eup %828  ;;  %v1597_v55 = vand.u32 2147483647, %v1273_v16  ;;  %v386_v40 = vmul.f32 1.442695, %v291_v52 }
  0x77   :  { %v444_v3 = vadd.f32 1.0, %v823_v39  ;;  %848 = vlog2.f32 %v442_v33  ;;  %v831_v62 = vpop.eup %830  ;;  %v515_v14 = vmul.f32 0.6931472, %v825_v54  ;;  %v596_v34 = vadd.f32 %v511_v7, %v1598_v44  ;;  %v1606_v7 = vld [vmem:[#allocation32_spill] sm:$0xff]  ;;  %v1607_v54 = vld [vmem:[#allocation35_spill] sm:$0xff] }
  0x78   :  { %v293_v37 = vsub.f32 0.0, %v1597_v55  ;;  %850 = vpow2.f32 %v382_v43  ;;  %v648_v21 = vadd.f32 %v647_v38, %v594_v45  ;;  %v833_v58 = vpop.eup %832  ;;  %v1599_v8 = vand.u32 2147483647, %v1277_v47  ;;  %v1610_v55 = vld [vmem:[#allocation36_spill] sm:$0xff] }
  0x79   :  { %v388_v41 = vmul.f32 1.442695, %v292_v17  ;;  %v445_v5 = vadd.f32 1.0, %v827_v53  ;;  %852 = vlog2.f32 %v443_v15  ;;  %v835_v49 = vpop.eup %834  ;;  %v517_v26 = vmul.f32 0.6931472, %v829_v9 }
  0x7a   :  { %v294_v57 = vsub.f32 0.0, %v1599_v8  ;;  %854 = vpow2.f32 %v384_v42  ;;  %v597_v27 = vadd.f32 %v513_v35, %v1600_v28  ;;  %v649_v46 = vadd.f32 %v648_v21, %v595_v32  ;;  %v837_v13 = vpop.eup %836 }
  0x7b   :  { %v1602_v31 = vand.u32 2147483647, %v1601_v6  ;;  %v390_v12 = vmul.f32 1.442695, %v293_v37  ;;  %v446_v29 = vadd.f32 1.0, %v831_v62  ;;  %856 = vlog2.f32 %v444_v3  ;;  %v839_v0 = vpop.eup %838 }
  0x7c   :  { %858 = vpow2.f32 %v386_v40  ;;  %v519_v22 = vmul.f32 0.6931472, %v833_v58  ;;  %v598_v51 = vadd.f32 %v515_v14, %v1603_v1  ;;  %v650_v18 = vadd.f32 %v649_v46, %v596_v34  ;;  %v841_v4 = vpop.eup %840  ;;  %v1612_v34 = vld [vmem:[#allocation34_spill] sm:$0xff] }
  0x7d   :  { %v295_v56 = vsub.f32 0.0, %v1602_v31  ;;  %v1605_v24 = vand.u32 2147483647, %v1604_v25  ;;  %v392_v52 = vmul.f32 1.442695, %v294_v57  ;;  %v447_v43 = vadd.f32 1.0, %v835_v49  ;;  %v843_v33 = vpop.eup %842 }
  0x7e   :  { %860 = vlog2.f32 %v445_v5  ;;  %v521_v39 = vmul.f32 0.6931472, %v837_v13  ;;  %v599_v30 = vadd.f32 %v517_v26, %v1606_v7  ;;  %v651_v45 = vadd.f32 %v650_v18, %v597_v27  ;;  %v1614_v27 = vld [vmem:[#allocation17_spill] sm:$0xff]  ;;  %v1617_v18 = vld [vmem:[#allocation8_spill] sm:$0xff] }
  0x7f   :  { %v296_v50 = vsub.f32 0.0, %v1605_v24  ;;  %862 = vpow2.f32 %v388_v41  ;;  %v845_v11 = vpop.eup %844  ;;  %v1608_v59 = vand.u32 2147483647, %v1607_v54  ;;  %v394_v42 = vmul.f32 1.442695, %v295_v56  ;;  %v1615_v56 = vld [vmem:[#allocation37_spill] sm:$0xff] }
  0x80   :  { %v448_v15 = vadd.f32 1.0, %v839_v0  ;;  %864 = vlog2.f32 %v446_v29  ;;  %v847_v53 = vpop.eup %846  ;;  %v523_v35 = vmul.f32 0.6931472, %v841_v4  ;;  %v600_v32 = vadd.f32 %v519_v22, %v1609_v63 }
  0x81   :  { %v297_v17 = vsub.f32 0.0, %v1608_v59  ;;  %866 = vpow2.f32 %v390_v12  ;;  %v652_v38 = vadd.f32 %v651_v45, %v598_v51  ;;  %v849_v9 = vpop.eup %848  ;;  %v1611_v37 = vand.u32 2147483647, %v1610_v55 }
  0x82   :  { %v396_v3 = vmul.f32 1.442695, %v296_v50  ;;  %v449_v62 = vadd.f32 1.0, %v843_v33  ;;  %868 = vlog2.f32 %v447_v43  ;;  %v851_v14 = vpop.eup %850  ;;  %v525_v44 = vmul.f32 0.6931472, %v845_v11  ;;  %v1620_v11 = vld [vmem:[#allocation18_spill] sm:$0xff] }
  0x83   :  { %v298_v40 = vsub.f32 0.0, %v1611_v37  ;;  %870 = vpow2.f32 %v392_v52  ;;  %v601_v21 = vadd.f32 %v521_v39, %v1612_v34  ;;  %v653_v58 = vadd.f32 %v652_v38, %v599_v30  ;;  %v853_v8 = vpop.eup %852  ;;  %v1618_v52 = vld [vmem:[#allocation38_spill] sm:$0xff]  ;;  %v1623_v37 = vld [vmem:[#allocation9_spill] sm:$0xff] }
  0x84   :  { %v1613_v57 = vand.u32 2147483647, %v1294_v23  ;;  %v398_v5 = vmul.f32 1.442695, %v297_v17  ;;  %v450_v49 = vadd.f32 1.0, %v847_v53  ;;  %872 = vlog2.f32 %v448_v15  ;;  %v855_v26 = vpop.eup %854  ;;  %v1621_v15 = vld [vmem:[#allocation39_spill] sm:$0xff] }
  0x85   :  { %874 = vpow2.f32 %v394_v42  ;;  %v527_v28 = vmul.f32 0.6931472, %v849_v9  ;;  %v602_v46 = vadd.f32 %v523_v35, %v1614_v27  ;;  %v654_v13 = vadd.f32 %v653_v58, %v600_v32  ;;  %v857_v31 = vpop.eup %856 }
  0x86   :  { %v299_v41 = vsub.f32 0.0, %v1613_v57  ;;  %v1616_v12 = vand.u32 2147483647, %v1615_v56  ;;  %v400_v0 = vmul.f32 1.442695, %v298_v40  ;;  %v451_v22 = vadd.f32 1.0, %v851_v14  ;;  %v859_v1 = vpop.eup %858 }
  0x87   :  { %876 = vlog2.f32 %v449_v62  ;;  %v529_v51 = vmul.f32 0.6931472, %v853_v8  ;;  %v603_v4 = vadd.f32 %v525_v44, %v1617_v18  ;;  %v655_v24 = vadd.f32 %v654_v13, %v601_v21  ;;  %v1624_v14 = vld [vmem:[#allocation40_spill] sm:$0xff]  ;;  %v927_v18 = vld [vmem:[#allocation2 + $0x120] sm:$0xff] }
  0x88   :  { %v300_v29 = vsub.f32 0.0, %v1616_v12  ;;  %878 = vpow2.f32 %v396_v3  ;;  %v861_v50 = vpop.eup %860  ;;  %v1619_v43 = vand.u32 2147483647, %v1618_v52  ;;  %v402_v39 = vmul.f32 1.442695, %v299_v41  ;;  %v1626_v41 = vld [vmem:[#allocation10_spill] sm:$0xff] }
  0x89   :  { %v452_v7 = vadd.f32 1.0, %v855_v26  ;;  %880 = vlog2.f32 %v450_v49  ;;  %v863_v30 = vpop.eup %862  ;;  %v531_v45 = vmul.f32 0.6931472, %v857_v31  ;;  %v604_v59 = vadd.f32 %v527_v28, %v1620_v11  ;;  %v926_v28 = vld [vmem:[#allocation2 + $0x118] sm:$0xff] }
  0x8a   :  { %v301_v33 = vsub.f32 0.0, %v1619_v43  ;;  %882 = vpow2.f32 %v398_v5  ;;  %v656_v17 = vadd.f32 %v655_v24, %v602_v46  ;;  %v865_v42 = vpop.eup %864  ;;  %v1622_v53 = vand.u32 2147483647, %v1621_v15 }
  0x8b   :  { %v404_v63 = vmul.f32 1.442695, %v300_v29  ;;  %v453_v32 = vadd.f32 1.0, %v859_v1  ;;  %884 = vlog2.f32 %v451_v22  ;;  %v867_v38 = vpop.eup %866  ;;  %v533_v9 = vmul.f32 0.6931472, %v861_v50 }
  0x8c   :  { %v302_v35 = vsub.f32 0.0, %v1622_v53  ;;  %886 = vpow2.f32 %v400_v0  ;;  %v605_v40 = vadd.f32 %v529_v51, %v1623_v37  ;;  %v657_v3 = vadd.f32 %v656_v17, %v603_v4  ;;  %v869_v62 = vpop.eup %868  ;;  %v1628_v0 = vld [vmem:[#allocation20_spill] sm:$0xff] }
  0x8d   :  { %v1625_v44 = vand.u32 2147483647, %v1624_v14  ;;  %v406_v21 = vmul.f32 1.442695, %v301_v33  ;;  %v454_v58 = vadd.f32 1.0, %v863_v30  ;;  %888 = vlog2.f32 %v452_v7  ;;  %v871_v8 = vpop.eup %870  ;;  %v929_v37 = vld [vmem:[#allocation2 + $0x130] sm:$0xff] }
  0x8e   :  { %890 = vpow2.f32 %v402_v39  ;;  %v535_v57 = vmul.f32 0.6931472, %v865_v42  ;;  %v606_v5 = vadd.f32 %v531_v45, %v1626_v41  ;;  %v658_v49 = vadd.f32 %v657_v3, %v604_v59  ;;  %v873_v26 = vpop.eup %872  ;;  %v1630_v39 = vld [vmem:[#allocation21_spill] sm:$0xff]  ;;  %v928_v59 = vld [vmem:[#allocation2 + $0x128] sm:$0xff] }
  0x8f   :  { %v303_v34 = vsub.f32 0.0, %v1625_v44  ;;  %v1627_v27 = vmax.f32 %v1129_v19, 0.0  ;;  %v408_v13 = vmul.f32 1.442695, %v302_v35  ;;  %v455_v31 = vadd.f32 1.0, %v867_v38  ;;  %v875_v12 = vpop.eup %874 }
  0x90   :  { %892 = vlog2.f32 %v453_v32  ;;  %v537_v29 = vmul.f32 0.6931472, %v869_v62  ;;  %v607_v22 = vadd.f32 %v533_v9, %v1628_v0  ;;  %v659_v1 = vadd.f32 %v658_v49, %v605_v40 }
  0x91   :  { %v177_v46 = vsub.f32 %v1627_v27, %v926_v28  ;;  %894 = vpow2.f32 %v404_v63  ;;  %v877_v51 = vpop.eup %876  ;;  %v1629_v4 = vmax.f32 %v1137_v10, 0.0  ;;  %v410_v50 = vmul.f32 1.442695, %v303_v34 }
  0x92   :  { %v456_v43 = vadd.f32 1.0, %v871_v8  ;;  %896 = vlog2.f32 %v454_v58  ;;  %v879_v33 = vpop.eup %878  ;;  %v539_v19 = vmul.f32 0.6931472, %v873_v26  ;;  %v608_v7 = vadd.f32 %v535_v57, %v1630_v39 }
  0x93   :  { %v178_v24 = vsub.f32 %v1629_v4, %v927_v18  ;;  %898 = vpow2.f32 %v406_v21  ;;  %v660_v30 = vadd.f32 %v659_v1, %v606_v5  ;;  %v881_v45 = vpop.eup %880  ;;  %v127_v11 = vmax.f32 %v1257_v48, 0.0 }
  0x94   :  { %v1631_v17 = vmax.f32 %v1139_v60, 0.0  ;;  %v457_v53 = vadd.f32 1.0, %v875_v12  ;;  %900 = vlog2.f32 %v455_v31  ;;  %v883_v10 = vpop.eup %882  ;;  %v541_v35 = vmul.f32 0.6931472, %v877_v51 }
  0x95   :  { %902 = vpow2.f32 %v408_v13  ;;  %v609_v63 = vadd.f32 %v537_v29, %v177_v46  ;;  %v661_v32 = vadd.f32 %v660_v30, %v607_v22  ;;  %v885_v38 = vpop.eup %884  ;;  %v128_v9 = vmax.f32 %v1261_v36, 0.0 }
  0x96   :  { %v179_v42 = vsub.f32 %v1631_v17, %v928_v59  ;;  %v1632_v40 = vmax.f32 %v1141_v20, 0.0  ;;  %v458_v62 = vadd.f32 1.0, %v879_v33  ;;  %904 = vlog2.f32 %v456_v43  ;;  %v887_v44 = vpop.eup %886 }
  0x97   :  { %906 = vpow2.f32 %v410_v50  ;;  %v543_v60 = vmul.f32 0.6931472, %v881_v45  ;;  %v610_v34 = vadd.f32 %v539_v19, %v178_v24  ;;  %v662_v21 = vadd.f32 %v661_v32, %v608_v7  ;;  %v889_v58 = vpop.eup %888 }
  0x98   :  { %v180_v3 = vsub.f32 %v1632_v40, %v929_v37  ;;  %v129_v8 = vmax.f32 %v1265_v61, 0.0  ;;  %v459_v57 = vadd.f32 1.0, %v883_v10  ;;  %908 = vlog2.f32 %v457_v53  ;;  %v891_v41 = vpop.eup %890 }
  0x99   :  { %v181_v5 = vsub.f32 %v127_v11, %v1257_v48  ;;  %v545_v49 = vmul.f32 0.6931472, %v885_v38  ;;  %v611_v26 = vadd.f32 %v541_v35, %v179_v42  ;;  %v663_v28 = vadd.f32 %v662_v21, %v609_v63 }
  0x9a   :  { %v893_v20 = vpop.eup %892  ;;  %v130_v27 = vmax.f32 %v1269_v2, 0.0  ;;  %v460_v46 = vadd.f32 1.0, %v887_v44  ;;  %910 = vlog2.f32 %v458_v62  ;;  %v182_v31 = vsub.f32 %v128_v9, %v1261_v36 }
  0x9b   :  { %v895_v13 = vpop.eup %894  ;;  %v547_v12 = vmul.f32 0.6931472, %v889_v58  ;;  %v612_v29 = vadd.f32 %v543_v60, %v180_v3  ;;  %v664_v0 = vadd.f32 %v663_v28, %v610_v34  ;;  %v131_v1 = vmax.f32 %v1273_v16, 0.0 }
  0x9c   :  { %v897_v22 = vpop.eup %896  ;;  %v461_v51 = vadd.f32 1.0, %v891_v41  ;;  %912 = vlog2.f32 %v459_v57  ;;  %v183_v18 = vsub.f32 %v129_v8, %v1265_v61  ;;  %v549_v4 = vmul.f32 0.6931472, %v893_v20 }
  0x9d   :  { %v899_v48 = vpop.eup %898  ;;  %v613_v24 = vadd.f32 %v545_v49, %v181_v5  ;;  %v665_v50 = vadd.f32 %v664_v0, %v611_v26  ;;  %v132_v33 = vmax.f32 %v1277_v47, 0.0  ;;  %v462_v19 = vadd.f32 1.0, %v895_v13 }
  0x9e   :  { %v901_v43 = vpop.eup %900  ;;  %914 = vlog2.f32 %v460_v46  ;;  %v184_v39 = vsub.f32 %v130_v27, %v1269_v2  ;;  %v551_v7 = vmul.f32 0.6931472, %v897_v22  ;;  %v614_v30 = vadd.f32 %v547_v12, %v182_v31 }
  0x9f   :  { %v903_v36 = vpop.eup %902  ;;  %v666_v45 = vadd.f32 %v665_v50, %v612_v29  ;;  %v133_v59 = vmax.f32 %v1601_v6, 0.0  ;;  %v463_v17 = vadd.f32 1.0, %v899_v48  ;;  %916 = vlog2.f32 %v461_v51 }
  0xa0   :  { %v905_v11 = vpop.eup %904  ;;  %v185_v42 = vsub.f32 %v131_v1, %v1273_v16  ;;  %v553_v53 = vmul.f32 0.6931472, %v901_v43  ;;  %v615_v10 = vadd.f32 %v549_v4, %v183_v18  ;;  %v134_v32 = vmax.f32 %v1604_v25, 0.0 }
  0xa1   :  { %v907_v61 = vpop.eup %906  ;;  %v667_v35 = vadd.f32 %v666_v45, %v613_v24  ;;  %v464_v38 = vadd.f32 1.0, %v903_v36  ;;  %918 = vlog2.f32 %v462_v19  ;;  %v186_v2 = vsub.f32 %v132_v33, %v1277_v47 }
  0xa2   :  { %v909_v63 = vpop.eup %908  ;;  %v555_v9 = vmul.f32 0.6931472, %v905_v11  ;;  %v616_v37 = vadd.f32 %v551_v7, %v184_v39  ;;  %v135_v62 = vmax.f32 %v1607_v54, 0.0  ;;  %v465_v44 = vadd.f32 1.0, %v907_v61 }
  0xa3   :  { %v668_v40 = vadd.f32 %v667_v35, %v614_v30  ;;  %920 = vlog2.f32 %v463_v17  ;;  %v187_v16 = vsub.f32 %v133_v59, %v1601_v6  ;;  %v557_v60 = vmul.f32 0.6931472, %v909_v63 }
  0xa4   :  { %v911_v3 = vpop.eup %910  ;;  %v617_v34 = vadd.f32 %v553_v53, %v185_v42  ;;  %v136_v8 = vmax.f32 %v1610_v55, 0.0  ;;  %922 = vlog2.f32 %v464_v38  ;;  %v188_v57 = vsub.f32 %v134_v32, %v1604_v25 }
  0xa5   :  { %v669_v21 = vadd.f32 %v668_v40, %v615_v10  ;;  %v559_v47 = vmul.f32 0.6931472, %v911_v3  ;;  %v618_v41 = vadd.f32 %v555_v9, %v186_v2  ;;  %v137_v26 = vmax.f32 %v1294_v23, 0.0 }
  0xa6   :  { %v913_v58 = vpop.eup %912  ;;  %924 = vlog2.f32 %v465_v44  ;;  %v189_v28 = vsub.f32 %v135_v62, %v1607_v54  ;;  %v619_v6 = vadd.f32 %v557_v60, %v187_v16  ;;  %v138_v13 = vmax.f32 %v1615_v56, 0.0 }
  0xa7   :  { %v670_v5 = vadd.f32 %v669_v21, %v616_v37  ;;  %v561_v20 = vmul.f32 0.6931472, %v913_v58  ;;  %v190_v31 = vsub.f32 %v136_v8, %v1610_v55  ;;  %v620_v29 = vadd.f32 %v559_v47, %v188_v57 }
  0xa8   :  { %v915_v49 = vpop.eup %914  ;;  %v139_v22 = vmax.f32 %v1618_v52, 0.0  ;;  %v191_v1 = vsub.f32 %v137_v26, %v1294_v23  ;;  %v140_v4 = vmax.f32 %v1621_v15, 0.0  ;;  %v192_v24 = vsub.f32 %v138_v13, %v1615_v56 }
  0xa9   :  { %v671_v27 = vadd.f32 %v670_v5, %v617_v34  ;;  %v917_v46 = vpop.eup %916  ;;  %v563_v12 = vmul.f32 0.6931472, %v915_v49  ;;  %v621_v48 = vadd.f32 %v561_v20, %v189_v28  ;;  %v141_v19 = vmax.f32 %v1624_v14, 0.0 }
  0xaa   :  { %v565_v51 = vmul.f32 0.6931472, %v917_v46  ;;  %v193_v36 = vsub.f32 %v139_v22, %v1618_v52  ;;  %v194_v45 = vsub.f32 %v140_v4, %v1621_v15  ;;  %v628_v15 = vld [vmem:[#allocation5] sm:$0x1] }
  0xab   :  { %v672_v25 = vadd.f32 %v671_v27, %v618_v41  ;;  %v919_v0 = vpop.eup %918  ;;  %v622_v43 = vadd.f32 %v563_v12, %v190_v31  ;;  %v195_v61 = vsub.f32 %v141_v19, %v1624_v14 }
  0xac   :  { %v567_v50 = vmul.f32 0.6931472, %v919_v0  ;;  %v623_v7 = vadd.f32 %v565_v51, %v191_v1 }
  0xad   :  { %v673_v18 = vadd.f32 %v672_v25, %v619_v6  ;;  %v921_v54 = vpop.eup %920 }
  0xae   :  { %v923_v55 = vpop.eup %922  ;;  %v569_v39 = vmul.f32 0.6931472, %v921_v54  ;;  %v624_v59 = vadd.f32 %v567_v50, %v192_v24 }
  0xaf   :  { %v674_v33 = vadd.f32 %v673_v18, %v620_v29  ;;  %v571_v11 = vmul.f32 0.6931472, %v923_v55 }
  0xb0   :  { %v925_v23 = vpop.eup %924  ;;  %v625_v42 = vadd.f32 %v569_v39, %v193_v36 }
  0xb1   :  { %v675_v30 = vadd.f32 %v674_v33, %v621_v48  ;;  %v573_v56 = vmul.f32 0.6931472, %v925_v23  ;;  %v626_v10 = vadd.f32 %v571_v11, %v194_v45 }
  0xb3   :  { %v676_v17 = vadd.f32 %v675_v30, %v622_v43  ;;  %v627_v63 = vadd.f32 %v573_v56, %v195_v61 }
  0xb5   :  { %v677_v53 = vadd.f32 %v676_v17, %v623_v7 }
  0xb7   :  { %v678_v35 = vadd.f32 %v677_v53, %v624_v59 }
  0xb9   :  { %v679_v32 = vadd.f32 %v678_v35, %v625_v42 }
  0xbb   :  { %v680_v38 = vadd.f32 %v679_v32, %v626_v10 }
  0xbd   :  { %v681_v52 = vadd.f32 %v680_v38, %v627_v63 }
  0xbf   :  { %v682_v2 = vrot.slane %v681_v52, 4 }
  0xc1   :  { %v683_v9 = vadd.f32 %v682_v2, %v681_v52 }
  0xc3   :  { %v684_v37 = vrot.slane %v683_v9, 2 }
  0xc5   :  { %v685_v40 = vadd.f32 %v684_v37, %v683_v9 }
  0xc7   :  { %v686_v3 = vrot.slane %v685_v40, 1 }
  0xc9   :  { %v687_v62 = vadd.f32 %v686_v3, %v685_v40 }
  0xcb   :  { %v688_v44 = vadd.f32 %v687_v62, %v628_v15 }
  0xcd   :  { %689 = vst [vmem:[#allocation5] sm:$0x1] %v688_v44 }
  0xce   :  { %963 = shalt.err (!%p960_p12)
}
  0xcf   :  { %s964_s25 = scalar_lea.hbm %s1475_s1, 16 }
  0xd0   :  { %p965_p13 = scmp.ne.s32.totalorder %s1475_s1, %s964_s25  ;;  %p968_p0 = scmp.lt.u32.totalorder %s964_s25, %s1475_s1 }
  0xd2   :  { %p970_p1 = pnand %p968_p0, %p965_p13 }
  0xd4   :  { %973 = shalt.err (!%p970_p1)
}
  0xd5   :  { %699 = dma.vmem_to_hbm [thread:$0]  %s697_s20, 16, %s1475_s1, [#allocation4]  }
  0xd6   :  { %976 = dma.done.wait [#allocation4], 16  }
  0xd7   :  { %977 = vsyncadd [#allocation4], 4294967280 }
  0xd8   :  { %703 = vsyncpa [#allocation3], 1 }
  0xd9   :  { %704 = vsyncpa [#allocation4], 1 }

</bundles_post_ra>
